<compile_context>
chip_gen: v5e
topology: v5e:2x2
jax: 0.10.0
libtpu: 0.0.40
codegen_flags: <defaults>
</compile_context>

<pallas_src>
import jax
import jax.numpy as jnp
from jax import lax
from jax.experimental import pallas as pl
from jax.experimental.pallas import tpu as pltpu


def _round_up(x, m):
    return (x + m - 1) // m * m


def _vmem_capacity_bytes():
    try:
        return int(pltpu.get_tpu_info().vmem_capacity_bytes)
    except Exception:
        return 64 * 1024 * 1024          # conservative fallback (v7x per-core VMEM)


def _pick_tile(dim, unit, cap):
    """Largest power-of-two multiple of `unit` <= cap, no larger than needed for `dim`."""
    need = _round_up(max(dim, 1), unit)
    t = unit
    while t * 2 <= cap and t < need:
        t *= 2
    return t


def _derive_tiles(c_out, p, ckp, out_bytes):
    """VMEM-budget-driven tile sizes (double-buffered bf16 in blocks + out block)."""
    budget = int(_vmem_capacity_bytes() * 0.6)
    tco = _pick_tile(c_out, 16, 512)      # bf16 sublane-friendly, cap 512 -> n_co == 1 usually
    tp = _pick_tile(p, 128, 1024)         # lane dim: multiple of 128

    def vmem_need(a, b):
        return 2 * (a * ckp * 2 + ckp * b * 2 + a * b * out_bytes)

    while vmem_need(tco, tp) > budget and (tco > 16 or tp > 128):
        if tp >= tco and tp > 128:
            tp //= 2
        elif tco > 16:
            tco //= 2
        else:
            tp //= 2
    # TODO(synk): for extremely large C_in*K*K (ckp alone exceeding the budget) a CK
    # reduction grid axis with an f32 accumulator scratch would be required.
    return tco, tp


# ---------------------------------------------------------------------------
# Pallas kernel: per-batch tiled matmul (all attentions pre-folded into the weight)
# ---------------------------------------------------------------------------
def _odconv_matmul_kernel(w_ref, patch_ref, out_ref):
    # w_ref    : (1, TCO, CKp) bf16   per-batch aggregated (attention-folded) weight tile
    # patch_ref: (1, CKp, TP)  bf16   im2col patch tile
    # out_ref  : (1, TCO, TP)  out dtype
    out_ref[0] = jnp.dot(
        w_ref[0], patch_ref[0], preferred_element_type=jnp.float32
    ).astype(out_ref.dtype)


def odconv_pallas(agg_w, patches, tco, tp, out_dtype):
    # agg_w   : (B, COp, CKp) bf16      patches: (B, CKp, Pp) bf16
    B, cop, ckp = agg_w.shape
    _, _, pp = patches.shape
    n_co = cop // tco
    n_p = pp // tp
    vmem_cap = _vmem_capacity_bytes()
    return pl.pallas_call(
        _odconv_matmul_kernel,
        out_shape=jax.ShapeDtypeStruct((B, cop, pp), out_dtype),
        grid_spec=pltpu.PrefetchScalarGridSpec(
            num_scalar_prefetch=0,
            grid=(B, n_co, n_p),
            in_specs=[
                pl.BlockSpec((1, tco, ckp), lambda b, co, p: (b, co, 0)),  # agg weight
                pl.BlockSpec((1, ckp, tp), lambda b, co, p: (b, 0, p)),    # im2col patches
            ],
            out_specs=pl.BlockSpec((1, tco, tp), lambda b, co, p: (b, co, p)),
        ),
        compiler_params=pltpu.CompilerParams(
            # No cross-iteration state -> every axis is safe to shard across cores.
            dimension_semantics=("parallel", "parallel", "parallel"),
            vmem_limit_bytes=int(vmem_cap * 3 // 4),
        ),
    )(agg_w, patches)


# ---------------------------------------------------------------------------
# Plain-JAX glue: parameter init, attention head, weight aggregation, im2col
# ---------------------------------------------------------------------------
def init_params(key, in_planes, out_planes, kernel_size, kernel_num,
                reduction=0.0625, min_channel=16):
    att_ch = max(int(in_planes * reduction), min_channel)
    ks = jax.random.split(key, 6)

    def kaiming(k, shape, fan_out):
        # kaiming_normal_(mode='fan_out', nonlinearity='relu') -> std = sqrt(2 / fan_out)
        return (2.0 / fan_out) ** 0.5 * jax.random.normal(k, shape, jnp.float32)

    K = kernel_size
    params = {
        # 1x1 conv weights stored as (out_channels, in_channels)
        "fc_w":      kaiming(ks[0], (att_ch, in_planes), att_ch),
        "channel_w": kaiming(ks[1], (in_planes, att_ch), in_planes),
        "channel_b": jnp.zeros((in_planes,), jnp.float32),
        "filter_w":  kaiming(ks[2], (out_planes, att_ch), out_planes),
        "filter_b":  jnp.zeros((out_planes,), jnp.float32),
        "spatial_w": kaiming(ks[3], (K * K, att_ch), K * K),
        "spatial_b": jnp.zeros((K * K,), jnp.float32),
        "kernel_w":  kaiming(ks[4], (kernel_num, att_ch), kernel_num),
        "kernel_b":  jnp.zeros((kernel_num,), jnp.float32),
        # main weight: (kernel_num, out, in//groups, K, K); per-candidate kaiming fan_out = out*K*K
        "weight": kaiming(ks[5], (kernel_num, out_planes, in_planes, K, K),
                          out_planes * K * K),
    }
    return params


def attention_glue(x, params, K, kernel_num, groups, out_planes,
                   temperature=1.0, eps=1e-5):
    # x: (B, C_in, H, W)
    B, C_in = x.shape[0], x.shape[1]
    pooled = jnp.mean(x, axis=(2, 3))                           # AdaptiveAvgPool2d(1) -> (B, C_in)
    t = pooled @ params["fc_w"].T                               # fc (1x1 conv, no bias)
    # TODO(synk): BatchNorm2d modeled with inference running stats (mean=0, var=1,
    # gamma=1, beta=0); training-mode batch statistics are not reproduced.
    t = t / jnp.sqrt(1.0 + eps)
    t = jnp.maximum(t, 0.0)                                     # ReLU

    chan = jax.nn.sigmoid((t @ params["channel_w"].T + params["channel_b"]) / temperature)
    if C_in == groups and C_in == out_planes:                   # PyTorch skip path
        filt = jnp.ones((B, out_planes), jnp.float32)
    else:
        filt = jax.nn.sigmoid((t @ params["filter_w"].T + params["filter_b"]) / temperature)
    if K == 1:                                                  # PyTorch skip path
        spat = jnp.ones((B, K * K), jnp.float32)
    else:
        spat = jax.nn.sigmoid((t @ params["spatial_w"].T + params["spatial_b"]) / temperature)
    if kernel_num == 1:                                         # PyTorch skip path
        katt = jnp.ones((B, 1), jnp.float32)
    else:
        katt = jax.nn.softmax((t @ params["kernel_w"].T + params["kernel_b"]) / temperature,
                              axis=1)
    return chan, filt, spat, katt


def _out_hw(H, W, K, stride, padding, dilation):
    H_out = (H + 2 * padding - dilation * (K - 1) - 1) // stride + 1
    W_out = (W + 2 * padding - dilation * (K - 1) - 1) // stride + 1
    return H_out, W_out


def im2col_bf16_padded(x, K, stride, padding, dilation, ckp, pp):
    # TODO(synk): a direct-conv Pallas path (grid over (kh,kw) with shifted-window
    # BlockSpecs on padded x) would avoid the K*K HBM blow-up of materialized im2col.
    B, C, H, W = x.shape
    xb = x.astype(jnp.bfloat16)                                 # bf16-first: half the traffic
    x_pad = jnp.pad(xb, ((0, 0), (0, 0), (padding, padding), (padding, padding)))
    H_out, W_out = _out_hw(H, W, K, stride, padding, dilation)
    cols = []
    for kh in range(K):
        for kw in range(K):
            sl = x_pad[:, :,
                       kh * dilation: kh * dilation + (H_out - 1) * stride + 1: stride,
                       kw * dilation: kw * dilation + (W_out - 1) * stride + 1: stride]
            cols.append(sl)                                     # (B, C, H_out, W_out) bf16
    col = jnp.stack(cols, axis=2).reshape(B, C * K * K, H_out * W_out)
    ck = C * K * K
    P = H_out * W_out
    return jnp.pad(col, ((0, 0), (0, ckp - ck), (0, pp - P)))   # (B, CKp, Pp) bf16


# ---------------------------------------------------------------------------
# Full ODConv2d forward
# ---------------------------------------------------------------------------
def odconv2d_forward(x, params, *, stride=1, padding=0, dilation=1, groups=1,
                     out_dtype=jnp.float32):
    # TODO(synk): grouped convolution (groups > 1) is not implemented in the Pallas path.
    assert groups == 1, "groups > 1 not supported by the Pallas path"
    B, C_in, H, W = x.shape
    kn, C_out, _, K, _ = params["weight"].shape

    chan, filt, spat, katt = attention_glue(x, params, K, kn, groups, C_out)

    H_out, W_out = _out_hw(H, W, K, stride, padding, dilation)
    P = H_out * W_out
    ck = C_in * K * K
    ckp = _round_up(ck, 16)                         # bf16 sublane packing on contraction dim

    out_bytes = jnp.dtype(out_dtype).itemsize
    tco, tp = _derive_tiles(C_out, P, ckp, out_bytes)
    cop = _round_up(C_out, tco)
    pp = _round_up(P, tp)

    # --- per-batch aggregated weight, precomputed OUTSIDE the streaming kernel ------
    # agg[b] = (sum_n katt[b,n] * W[n]) * (chan[b] (x) spat[b]) * filt[b]
    # FLOPs ~ kn*C_out*ck per batch -- negligible vs the conv matmul; keeps the kn
    # candidate weights out of the hot kernel's DMA/VMEM and deletes the per-tile
    # filter-attention pass over the output.
    w_flat = params["weight"].reshape(kn, C_out, ck)
    agg = jnp.einsum("bn,nok->bok", katt, w_flat)                      # (B, C_out, ck) f32
    scale = (chan[:, :, None] * spat[:, None, :]).reshape(B, ck)       # chan (x) spat
    agg = agg * scale[:, None, :] * filt[:, :, None]
    agg_p = jnp.pad(agg, ((0, 0), (0, cop - C_out), (0, ckp - ck))).astype(jnp.bfloat16)

    # --- bf16 im2col emitted directly into the padded kernel layout ------------------
    patches_p = im2col_bf16_padded(x, K, stride, padding, dilation, ckp, pp)

    out = odconv_pallas(agg_p, patches_p, tco, tp, out_dtype)          # (B, COp, Pp)
    return out[:, :C_out, :P].reshape(B, C_out, H_out, W_out)


# ---------------------------------------------------------------------------
# Pure-JAX reference (mirrors the PyTorch math) for a correctness check
# ---------------------------------------------------------------------------
def reference_forward(x, params, *, stride=1, padding=0, dilation=1):
    B, C_in, H, W = x.shape
    kn, C_out, _, K, _ = params["weight"].shape
    chan, filt, spat, katt = attention_glue(x, params, K, kn, 1, C_out)
    x_scaled = x * chan[:, :, None, None]
    agg = (spat.reshape(B, 1, 1, 1, K, K)
           * katt[:, :, None, None, None, None]
           * params["weight"][None]).sum(axis=1)                # (B, C_out, C_in, K, K)
    outs = []
    for b in range(B):
        o = lax.conv_general_dilated(
            x_scaled[b:b + 1], agg[b],
            window_strides=(stride, stride),
            padding=[(padding, padding), (padding, padding)],
            rhs_dilation=(dilation, dilation),
            dimension_numbers=("NCHW", "OIHW", "NCHW"))
        outs.append(o[0])
    return jnp.stack(outs) * filt[:, :, None, None]


if __name__ == "__main__":
    B, C_in, C_out, K, H, W = 2, 4, 8, 3, 16, 16
    stride, padding, dilation, kernel_num = 1, 1, 1, 4

    key = jax.random.PRNGKey(0)
    kx, kp = jax.random.split(key)
    x = jax.random.normal(kx, (B, C_in, H, W), jnp.float32)
    params = init_params(kp, C_in, C_out, K, kernel_num)

    # default f32 output (matches the PyTorch module dtype)
    out = odconv2d_forward(x, params, stride=stride, padding=padding, dilation=dilation)
    out = jax.block_until_ready(out)

    ref = reference_forward(x, params, stride=stride, padding=padding, dilation=dilation)
    assert out.shape == (B, C_out, H, W), out.shape
    err = float(jnp.max(jnp.abs(out - ref)))
    # bf16 MXU operands (aggregated weight / patches) -> looser tolerance than an
    # all-f32 path; accumulation is f32.
    assert jnp.allclose(out, ref, atol=3e-2, rtol=3e-2), f"max abs err = {err}"

    # exercise the bandwidth-saving bf16-output path as well
    out_bf16 = odconv2d_forward(x, params, stride=stride, padding=padding,
                                dilation=dilation, out_dtype=jnp.bfloat16)
    out_bf16 = jax.block_until_ready(out_bf16)
    err_bf16 = float(jnp.max(jnp.abs(out_bf16.astype(jnp.float32) - ref)))
    assert jnp.allclose(out_bf16.astype(jnp.float32), ref, atol=5e-2, rtol=5e-2), \
        f"bf16-out max abs err = {err_bf16}"

    print("KERNEL_OK")
</pallas_src>

<mosaic_0001>
module attributes {stable_mosaic.version = 11 : i64} {
  func.func @_odconv_matmul_kernel(%arg0: i32, %arg1: i32, %arg2: i32, %arg3: memref<1x16x48xbf16, #tpu.memory_space<vmem>>, %arg4: memref<1x48x256xbf16, #tpu.memory_space<vmem>>, %arg5: memref<1x16x256xf32, #tpu.memory_space<vmem>>) attributes {dimension_semantics = [#tpu.dimension_semantics<parallel>, #tpu.dimension_semantics<parallel>, #tpu.dimension_semantics<parallel>], iteration_bounds = array<i64: 2, 1, 1>, scalar_prefetch = 0 : i64, scratch_operands = 0 : i64, tpu.core_type = #tpu.core_type<tc>, window_params = [{transform_indices = @transform_0, window_bounds = array<i64: 1, 16, 48>}, {transform_indices = @transform_1, window_bounds = array<i64: 1, 48, 256>}, {transform_indices = @transform_2, window_bounds = array<i64: 1, 16, 256>}]} {
    %c0 = arith.constant 0 : index
    %c0_0 = arith.constant 0 : index
    %c0_1 = arith.constant 0 : index
    %0 = vector.load %arg3[%c0, %c0_0, %c0_1] : memref<1x16x48xbf16, #tpu.memory_space<vmem>>, vector<1x16x48xbf16>
    %1 = vector.shape_cast %0 : vector<1x16x48xbf16> to vector<16x48xbf16>
    %c0_2 = arith.constant 0 : index
    %c0_3 = arith.constant 0 : index
    %c0_4 = arith.constant 0 : index
    %2 = vector.load %arg4[%c0_2, %c0_3, %c0_4] : memref<1x48x256xbf16, #tpu.memory_space<vmem>>, vector<1x48x256xbf16>
    %3 = vector.shape_cast %2 : vector<1x48x256xbf16> to vector<48x256xbf16>
    %cst = arith.constant dense<0.000000e+00> : vector<16x256xf32>
    %4 = tpu.matmul %1, %3, %cst {dimension_numbers = #tpu.dot_dimension_numbers<[1], [0], [0], [1], [0, 0, 1, 1], [], []>} : vector<16x48xbf16>, vector<48x256xbf16>, vector<16x256xf32> -> vector<16x256xf32>
    %c0_5 = arith.constant 0 : index
    %c0_6 = arith.constant 0 : index
    %c0_7 = arith.constant 0 : index
    %5 = vector.load %arg5[%c0_5, %c0_6, %c0_7] : memref<1x16x256xf32, #tpu.memory_space<vmem>>, vector<1x16x256xf32>
    %6 = vector.shape_cast %5 : vector<1x16x256xf32> to vector<16x256xf32>
    %7 = vector.shape_cast %4 : vector<16x256xf32> to vector<1x16x256xf32>
    tpu.vector_store %arg5[%c0_5, %c0_6, %c0_7], %7 {strides = array<i32>} : memref<1x16x256xf32, #tpu.memory_space<vmem>>, vector<1x16x256xf32>,
    return
  }
  func.func @transform_0(%arg0: i32, %arg1: i32, %arg2: i32) -> (i32, i32, i32) {
    %c0_i32 = arith.constant 0 : i32
    %c0_i32_0 = arith.constant 0 : i32
    return %arg0, %arg1, %c0_i32 : i32, i32, i32
  }
  func.func @transform_1(%arg0: i32, %arg1: i32, %arg2: i32) -> (i32, i32, i32) {
    %c0_i32 = arith.constant 0 : i32
    %c0_i32_0 = arith.constant 0 : i32
    return %arg0, %c0_i32, %arg2 : i32, i32, i32
  }
  func.func @transform_2(%arg0: i32, %arg1: i32, %arg2: i32) -> (i32, i32, i32) {
    %c0_i32 = arith.constant 0 : i32
    return %arg0, %arg1, %arg2 : i32, i32, i32
  }
}

</mosaic_0001>

<bundles_post_ra>
// kernel: tpu_custom_call.1
= control target key start
LH: loop header
LB: loop body
LE: loop exit
PB: predicated region body
PF: predicated region fallthrough
CT: control target
= control target key end

     0   :  { %s905_s0 = inlined_call_operand.hbm [shape: bf16[2,16,48], index: 0, kind: input, shape index: {}]   ;;  %s906_s1 = inlined_call_operand.hbm [shape: bf16[2,48,256], index: 1, kind: input, shape index: {}]   ;;  %s907_s2 = inlined_call_operand.hbm [shape: f32[2,16,256], index: 2, kind: output, shape index: {}]  }
   0x1   :  { %908 = sst [smem:[#allocation11_spill]] %s905_s0 }
   0x2   :  { %7 = vsyncpa [#allocation3], 0 }
   0x3   :  { %9 = vsyncpa [#allocation3 + $0x1], 0 }
   0x4   :  { %10 = vsyncpa [#allocation6], 0 }
   0x5   :  { %12 = vsyncpa [#allocation6 + $0x1], 0 }
   0x6   :  { %13 = vsyncpa [#allocation4], 0 }
   0x7   :  { %15 = vsyncpa [#allocation4 + $0x1], 0  ;;  %s760_s9 = smov 0   ;;  %s762_s10 = smov 0  }
   0x8   :  { %s764_s11 = smov 0   ;;  %s766_s12 = smov 0  }
   0x9   :  { %s768_s13 = smov 0   ;;  %s770_s14 = smov 0  }
   0xa LB: > { %s460_s15 = sadd.s32 4294967295, %s737_s14   ;;  %s461_s16 = sadd.s32 4294967294, %s737_s14   ;;  %s737_s14 = sphi %s770_s14, %s21_s14   ;;  %s733_s13 = sphi %s768_s13, %s919_s13   ;;  %s729_s12 = sphi %s766_s12, %s918_s12   ;;  %s725_s11 = sphi %s764_s11, %s917_s11   ;;  %s721_s10 = sphi %s762_s10, %s916_s10   ;;  %s717_s9 = sphi %s760_s9, %s915_s9  }
   0xb   : > { %s40_s17 = sadd.s32 1, %s733_s13  ;;  %s49_s18 = sadd.s32 1, %s725_s11 }
   0xc   : > { %p42_p0 = scmp.ge.s32.totalorder %s40_s17, 2  ;;  %p56_p1 = scmp.ne.s32.totalorder %s725_s11, %s721_s10 }
   0xd   : > { %p57_p2 = scmp.eq.s32.totalorder %s737_s14, 0  ;;  %p62_p3 = scmp.ne.s32.totalorder %s721_s10, %s717_s9 }
   0xe   : > { %s921_s17 = smov (%p42_p0, %s40_s17), 0  ;;  %p63_p5 = scmp.eq.s32.totalorder %s460_s15, 0 }
   0xf   : > { %p801_p4 = por %p57_p2, %p56_p1  ;;  %s44_s20 = ssub.s32 %s733_s13, %s921_s17 }
  0x10   : > { %p118_p6 = scmp.eq.s32.totalorder %s460_s15, 1  ;;  %p47_p7 = scmp.eq.s32.totalorder %s44_s20, 0 }
  0x11   : > { %p807_p8 = por %p63_p5, %p62_p3  ;;  %p124_p10 = scmp.eq.s32.totalorder %s461_s16, 1 }
  0x12   : > { %p811_p9 = por %p118_p6, %p56_p1  ;;  %p463_p12 = scmp.ge.s32.totalorder %s737_s14, 2 }
  0x13   : > { %s816_s23 = scalar_select %p47_p7, %s725_s11, %s49_s18  }
  0x14   : > { %p818_p11 = por %p124_p10, %p62_p3  ;;  %p535_p13 = scmp.lt.s32.totalorder %s737_s14, 2 }
  0x15   : > { %s825_s25 = sand.u32 1, %s725_s11   ;;  %s506_s27 = sshll.u32 %s733_s13, 3 }
  0x16   : > { %s464_s26 = sshll.u32 %s825_s25, 3  ;;  %s913_s0 = sld [smem:[#allocation11_spill]] }
  0x17   : > { %s148_s3 = scalar_lea.vmem [#allocation2], %s464_s26  ;;  %p834_p0 = pnand %p535_p13, %p801_p4 }
  0x18   : > { %s158_s4 = sshll.u32 %s148_s3, 4  ;;  %p468_p1 = scmp.ge.s32.totalorder %s737_s14, 1  ;;  %s159_s4 = int_to_ptr.vmem [resolvable:$true] %s158_s4 }
  0x19   : > { %s145_s7 = scalar_lea.sflag [#allocation3], %s825_s25  ;;  %s739_s8 = smov 64  }
  0x1a   : > { %s740_s15 = smov 4   ;;  %p190_p2 = scmp.lt.s32.totalorder %s737_s14, 3 }
  0x1b   : > { %s515_s16 = smul.u32 48, %s825_s25  ;;  %s741_s3 = smov 128  }
  0x1c   : > { %s155_s30 = scalar_lea.hbm %s913_s0, %s506_s27  ;;  %p191_p3 = pnand %p468_p1, %p190_p2 }
  0x1d   : > { %s156_s5 = sshll.u32 %s155_s30, 4  ;;  %s516_s18 = smul.u32 48, %s733_s13  ;;  %s157_s5 = int_to_ptr.hbm [resolvable:$true] %s156_s5 }
  0x1e   : > { %527 = dma.hbm_to_vmem [thread:$0]  (!%p834_p0), %s157_s5, 128, %s159_s4, %s145_s7, %s739_s8, %s739_s8, %s740_s15  }
  0x1f   : > { %s179_s19 = scalar_lea.hbm %s906_s1, %s516_s18  ;;  %s172_s27 = scalar_lea.vmem [#allocation5], %s515_s16 }
  0x20   : > { %s182_s28 = sshll.u32 %s172_s27, 4  ;;  %s180_s29 = sshll.u32 %s179_s19, 4  ;;  %s183_s28 = int_to_ptr.vmem [resolvable:$true] %s182_s28  ;;  %s181_s29 = int_to_ptr.hbm [resolvable:$true] %s180_s29 }
  0x21   : > { %s169_s30 = scalar_lea.sflag [#allocation6], %s825_s25  ;;  %s742_s0 = smov 8  }
  0x22   : > { %530 = dma.hbm_to_vmem [thread:$0]  (!%p834_p0), %s181_s29, 768, %s183_s28, %s169_s30, %s741_s3, %s741_s3, %s742_s0  }
  0x23   : > { %194 = sbr.rel (%p191_p3) target bundleno = 198 (0xc6), region = 28  ;;  %s852_s4 = sand.u32 (!%p191_p3), 1, %s721_s10  }
  0x24   : > { %s469_s5 = sshll.u32 (!%p191_p3), %s852_s4, 3  ;;  %s197_s7 = scalar_lea.sflag (!%p191_p3), [#allocation3], %s852_s4 }
  0x25   : > { %s200_s8 = scalar_lea.vmem (!%p191_p3), [#allocation2], %s469_s5 }
  0x28   : > { %704 = dma.done.wait (%p807_p8), %s197_s7, 128  }
  0x29   : > { %706 = vsyncadd (%p807_p8), %s197_s7, 4294967168  ;;  %s517_s25 = smul.u32 48, %s852_s4  ;;  %s207_s0 = scalar_lea.sflag [#allocation6], %s852_s4 }
  0x2b   : > { %s210_s6 = scalar_lea.vmem [#allocation5], %s517_s25 }
  0x2c   : > { %708 = dma.done.wait (%p807_p8), %s207_s0, 768  }
  0x2d   : > { %710 = vsyncadd (%p807_p8), %s207_s0, 4294966528  ;;  %v493_v0 = vld [vmem:[%s210_s6 + $0x20] sm:$0xf]  ;;  %v513_v1 = vld [vmem:[%s210_s6 + $0x24] sm:$0xf0]  ;;  %vm285_vm0 = vcmask 392192  }
  0x2e   : > { %v512_v2 = vld [vmem:[%s210_s6 + $0x24] sm:$0xf]  ;;  %v494_v3 = vor.u32 %v513_v1, %v493_v0  ;;  %v495_v4 = vld [vmem:[%s210_s6 + $0x28] sm:$0xf0]  ;;  %v485_v5 = vld [vmem:[%s210_s6 + $0x10] sm:$0xf] }
  0x2f   : > { %v511_v6 = vld [vmem:[%s210_s6 + $0x14] sm:$0xf0]  ;;  %v498_v7 = vor.u32 %v512_v2, %v495_v4  ;;  %v510_v8 = vld [vmem:[%s210_s6 + $0x14] sm:$0xf]  ;;  %v487_v9 = vld [vmem:[%s210_s6 + $0x18] sm:$0xf0] }
  0x30   : > { %294 = vmatpush.bf16.msra.mxu0 %v494_v3  ;;  %v486_v10 = vor.u32 %v511_v6, %v485_v5  ;;  %v490_v11 = vor.u32 %v510_v8, %v487_v9  ;;  %v477_v12 = vld [vmem:[%s210_s6] sm:$0xf]  ;;  %v509_v13 = vld [vmem:[%s210_s6 + $0x4] sm:$0xf0]  ;;  %v508_v14 = vld [vmem:[%s210_s6 + $0x4] sm:$0xf] }
  0x31   : > { %308 = vmatpush.bf16.msra.mxu1 %v498_v7  ;;  %v479_v15 = vld [vmem:[%s210_s6 + $0x8] sm:$0xf0]  ;;  %v478_v16 = vor.u32 %v509_v13, %v477_v12  ;;  %s470_s21 = sshll.u32 %s852_s4, 5  ;;  %s514_s15 = sshll.u32 %s729_s12, 5 }
  0x32   : > { %v482_v17 = vor.u32 %v508_v14, %v479_v15  ;;  %v507_v18 = vld [vmem:[%s200_s8] sm:$0xff]  ;;  %s236_s16 = scalar_lea.vmem [#allocation7], %s470_s21  ;;  %s338_s26 = scalar_lea.hbm %s907_s2, %s514_s15 }
  0x33   : > { %s339_s19 = sshll.u32 %s236_s16, 4  ;;  %s341_s27 = sshll.u32 %s338_s26, 4  ;;  %s340_s19 = int_to_ptr.vmem [resolvable:$true] %s339_s19  ;;  %s342_s27 = int_to_ptr.hbm [resolvable:$true] %s341_s27 }
  0x34   : > { %295 = vmatpush.bf16.msra.mxu0 %v486_v10  ;;  %s322_s28 = scalar_lea.sflag [#allocation4], %s852_s4  ;;  %s665_s12 = sshra.s32 %s342_s27, 4  ;;  %s666_s12 = int_to_ptr.hbm [resolvable:$true] %s665_s12 }
  0x35   : > { %309 = vmatpush.bf16.msra.mxu1 %v490_v11  ;;  %s667_s29 = scalar_lea.hbm %s666_s12, 32  ;;  %s671_s5 = scalar_lea.hbm %s907_s2, 64 }
  0x36   : > { %p668_p4 = scmp.ne.s32.totalorder %s666_s12, %s667_s29  ;;  %p672_p7 = scmp.lt.s32.totalorder %s666_s12, %s907_s2 }
  0x37   : > { %p673_p8 = scmp.lt.s32.totalorder %s671_s5, %s667_s29 }
  0x38   : > { %296 = vmatpush.bf16.msra.mxu0 %v478_v16  ;;  %p669_p5 = pnand %p668_p4, %p811_p9 }
  0x39   : > { %310 = vmatpush.bf16.msra.mxu1 %v482_v17  ;;  %p674_p10 = por %p673_p8, %p672_p7 }
  0x3a   : > { %p670_p6 = pneg %p669_p5 }
  0x3b   : > { %499 = vmatmul.msk.bf16.vlgmr.msra.gmra.mxu0 %vm285_vm0, %v507_v18 }
  0x3c   : > { %500 = vmatmul.msk.bf16.vlgmr.msra.gmra.mxu1 %vm285_vm0, %v507_v18  ;;  %p675_p13 = pnand %p674_p10, %p670_p6 }
  0xb8   : > { %v298_v19 = vpop.f32.mrf.mxu0 }
  0xb9   : > { %317 = vst [vmem:[%s236_s16] sm:$0xff] %v298_v19  ;;  %v312_v20 = vpop.f32.mrf.mxu1 }
  0xba   : > { %318 = vst [vmem:[%s236_s16 + $0x8] sm:$0xff] %v312_v20 }
  0xc0   : > { %v300_v21 = vpop.f32.mrf.mxu0 }
  0xc1   : > { %319 = vst [vmem:[%s236_s16 + $0x10] sm:$0xff] %v300_v21  ;;  %v314_v22 = vpop.f32.mrf.mxu1 }
  0xc2   : > { %320 = vst [vmem:[%s236_s16 + $0x18] sm:$0xff] %v314_v22 }
  0xc3   : > { %678 = shalt.err (!%p675_p13)
}
  0xc4   : > { %s743_s4 = smov 256   ;;  %s744_s25 = smov 16  }
  0xc5   : > { %522 = dma.vmem_to_hbm [thread:$0]  (%p811_p9), %s340_s19, 512, %s342_s27, %s322_s28, %s743_s4, %s743_s4, %s744_s25  }
  0xc6 PF: > { %s356_s0 = sand.u32 1, %s717_s9   ;;  %p532_p0 = pnand %p463_p12, %p818_p11 }
  0xc7   : > { %s357_s6 = scalar_lea.sflag [#allocation4], %s356_s0 }
  0xc8   : > { %p533_p1 = pneg %p532_p0 }
  0xca   : > { %712 = dma.done.wait (%p533_p1), %s357_s6, 512  }
  0xcb   : > { %714 = vsyncadd (%p533_p1), %s357_s6, 4294966784  ;;  %s21_s14 = sadd.s32 1, %s737_s14   ;;  %s915_s9 = smov %s721_s10 }
  0xcc   : > { %p18_p2 = scmp.ge.s32.totalorder %s21_s14, 4   ;;  %s916_s10 = smov %s725_s11 }
  0xcd   : > { %s917_s11 = smov %s816_s23  ;;  %s918_s12 = smov %s733_s13 }
  0xce   : > { %s919_s13 = smov %s921_s17  ;;  %20 = sbr.rel (!%p18_p2) target bundleno = 10 (0xa), region = 86 }
  0xd3   :  { %363 = vsyncpa [#allocation3], 1 }
  0xd4   :  { %365 = vsyncpa [#allocation3 + $0x1], 1 }
  0xd5   :  { %366 = vsyncpa [#allocation6], 1 }
  0xd6   :  { %368 = vsyncpa [#allocation6 + $0x1], 1 }
  0xd7   :  { %369 = vsyncpa [#allocation4], 1 }
  0xd8   :  { %371 = vsyncpa [#allocation4 + $0x1], 1 }

</bundles_post_ra>
